<compile_context>
chip_gen: v5e
topology: v5e:2x2
jax: 0.10.0
libtpu: 0.0.40
codegen_flags: <defaults>
</compile_context>

<pallas_src>
import functools

import jax
import jax.numpy as jnp
from jax.experimental import pallas as pl
from jax.experimental.pallas import tpu as pltpu


def _cb_ce_partial_kernel(logit_ref, target_ref, weight_ref, part_ref,
                          *, n_rows, tile_n):
    # logit_ref : (TN, C)  model dtype, VMEM
    # target_ref: (TN, 1)  int32, VMEM
    # weight_ref: (1,  C)  float32, VMEM (same block every step -> no re-DMA)
    # part_ref  : (1, 8, 128) float32 partials: lane 0 = num, lane 1 = den
    i = pl.program_id(0)

    x = logit_ref[...].astype(jnp.float32)            # (TN, C)
    t = target_ref[...]                                # (TN, 1) int32
    w = weight_ref[...]                                # (1, C)  f32

    # Numerically-stable log-sum-exp over classes (row-wise).
    m = jnp.max(x, axis=-1, keepdims=True)                              # (TN, 1)
    lse = jnp.log(jnp.sum(jnp.exp(x - m), axis=-1, keepdims=True)) + m  # (TN, 1)

    # Gather the target logit / target class weight with where-selects
    # (no one-hot temporary, no full-width log-prob tensor).
    cls_ids = jax.lax.broadcasted_iota(jnp.int32, x.shape, 1)           # (TN, C)
    sel = cls_ids == t                                                  # (TN, C)
    x_t = jnp.sum(jnp.where(sel, x, 0.0), axis=-1, keepdims=True)       # (TN, 1)
    w_t = jnp.sum(jnp.where(sel, w, 0.0), axis=-1, keepdims=True)       # (TN, 1)
    logp_t = x_t - lse                                                  # (TN, 1)

    # Mask padded rows of the (possibly partial) last tile.  Selects only:
    # garbage/NaN in the padded region cannot propagate into the sums.
    row = jax.lax.broadcasted_iota(jnp.int32, (tile_n, 1), 0) + i * tile_n
    valid = row < n_rows
    w_t = jnp.where(valid, w_t, 0.0)
    nll = jnp.where(valid, -w_t * logp_t, 0.0)

    num = jnp.sum(nll)              # scalar partial numerator
    den = jnp.sum(w_t)              # scalar partial denominator

    lane = jax.lax.broadcasted_iota(jnp.int32, (1, 8, 128), 2)
    part_ref[...] = jnp.where(lane == 0, num, jnp.where(lane == 1, den, 0.0))


def class_balanced_loss(logit, target, per_cls_weights, *, tile_n=None):
    """Weighted mean cross-entropy; logit [N, C], target [N] int, weights [C]."""
    N, C = logit.shape

    c_pad = pl.cdiv(C, 128) * 128
    itemsize = jnp.dtype(logit.dtype).itemsize

    # Auto tile size: keep the double-buffered logit tile around ~8 MiB,
    # rows a multiple of 8, capped at 2048 rows (sweepable).
    if tile_n is None:
        budget = 8 * 1024 * 1024
        rows = budget // (2 * c_pad * max(itemsize, 1))
        tile_n = int(min(2048, max(8, (rows // 8) * 8)))

    tn = N if N <= tile_n else max(8, (tile_n // 8) * 8)
    grid_n = pl.cdiv(N, tn)

    target2d = target.astype(jnp.int32).reshape(N, 1)
    weights2d = per_cls_weights.astype(jnp.float32).reshape(1, C)

    # Explicit scoped-VMEM request: double-buffered logit tile + slack,
    # clamped so it never exceeds what v7x (64 MiB physical) can grant.
    vmem_bytes = int(min(48 * 1024 * 1024,
                         max(16 * 1024 * 1024,
                             4 * tn * c_pad * itemsize + (4 << 20))))

    kernel = functools.partial(_cb_ce_partial_kernel, n_rows=N, tile_n=tn)

    partials = pl.pallas_call(
        kernel,
        out_shape=jax.ShapeDtypeStruct((grid_n, 8, 128), jnp.float32),
        grid=(grid_n,),
        in_specs=[
            pl.BlockSpec((tn, C), lambda i: (i, 0)),   # logits tile
            pl.BlockSpec((tn, 1), lambda i: (i, 0)),   # targets tile
            pl.BlockSpec((1, C), lambda i: (0, 0)),    # class weights (shared)
        ],
        out_specs=pl.BlockSpec((1, 8, 128), lambda i: (i, 0, 0)),
        compiler_params=pltpu.CompilerParams(
            dimension_semantics=("parallel",),
            vmem_limit_bytes=vmem_bytes),
    )(logit, target2d, weights2d)

    num = jnp.sum(partials[:, 0, 0])
    den = jnp.sum(partials[:, 0, 1])
    return num / den   # NaN if all selected weights are zero (same as PyTorch)


def make_per_cls_weights(cls_num_list, beta=0.9999):
    """Deterministic parameter construction, mirroring the PyTorch __init__."""
    n = jnp.asarray(cls_num_list, dtype=jnp.float32)
    w = (1.0 - beta) / (1.0 - beta ** n)
    w = w / jnp.mean(w)
    return w.astype(jnp.float32)


def _reference_loss(logit, target, per_cls_weights):
    logp = jax.nn.log_softmax(logit.astype(jnp.float32), axis=-1)
    w_t = per_cls_weights[target]
    n = logit.shape[0]
    return jnp.sum(-w_t * logp[jnp.arange(n), target]) / jnp.sum(w_t)


if __name__ == "__main__":
    key = jax.random.PRNGKey(0)

    # --- Test 1: small shapes matching the module's typical use -------------
    N, C = 8, 4                               # batch of 8, 4 classes
    cls_num_list = [50.0, 10.0, 200.0, 5.0]   # synthetic class counts

    k1, k2 = jax.random.split(key)
    logit = jax.random.normal(k1, (N, C), dtype=jnp.float32)
    target = jax.random.randint(k2, (N,), 0, C, dtype=jnp.int32)
    per_cls_weights = make_per_cls_weights(cls_num_list, beta=0.9999)

    loss = jax.block_until_ready(class_balanced_loss(logit, target, per_cls_weights))
    ref = _reference_loss(logit, target, per_cls_weights)
    assert jnp.allclose(loss, ref, rtol=1e-5, atol=1e-6), (loss, ref)

    # --- Test 2: exercises batch tiling + partial-tile masking ---------------
    N2, C2 = 272, 160                          # 3 tiles of 128 rows, last partial
    k3, k4, k5 = jax.random.split(key, 3)
    logit2 = jax.random.normal(k3, (N2, C2), dtype=jnp.float32)
    target2 = jax.random.randint(k4, (N2,), 0, C2, dtype=jnp.int32)
    counts2 = jax.random.randint(k5, (C2,), 1, 500).astype(jnp.float32)
    weights2 = make_per_cls_weights(counts2, beta=0.9999)

    loss2 = jax.block_until_ready(
        class_balanced_loss(logit2, target2, weights2, tile_n=128))
    ref2 = _reference_loss(logit2, target2, weights2)
    assert jnp.allclose(loss2, ref2, rtol=2e-5, atol=1e-5), (loss2, ref2)

    print("KERNEL_OK")
</pallas_src>

<mosaic_0001>
module attributes {stable_mosaic.version = 11 : i64} {
  func.func @_cb_ce_partial_kernel(%arg0: i32, %arg1: memref<8x4xf32, #tpu.memory_space<vmem>>, %arg2: memref<8x1xi32, #tpu.memory_space<vmem>>, %arg3: memref<1x4xf32, #tpu.memory_space<vmem>>, %arg4: memref<1x8x128xf32, #tpu.memory_space<vmem>>) attributes {dimension_semantics = [#tpu.dimension_semantics<parallel>], iteration_bounds = array<i64: 1>, scalar_prefetch = 0 : i64, scratch_operands = 0 : i64, tpu.core_type = #tpu.core_type<tc>, window_params = [{transform_indices = @transform_0, window_bounds = array<i64: 8, 4>}, {transform_indices = @transform_1, window_bounds = array<i64: 8, 1>}, {pipeline_mode = #tpu.pipeline_mode<synchronous>, transform_indices = @transform_2, window_bounds = array<i64: 1, 4>}, {transform_indices = @transform_3, window_bounds = array<i64: 1, 8, 128>}]} {
    %c0 = arith.constant 0 : index
    %c0_0 = arith.constant 0 : index
    %0 = vector.load %arg1[%c0, %c0_0] : memref<8x4xf32, #tpu.memory_space<vmem>>, vector<8x4xf32>
    %c0_1 = arith.constant 0 : index
    %c0_2 = arith.constant 0 : index
    %1 = vector.load %arg2[%c0_1, %c0_2] : memref<8x1xi32, #tpu.memory_space<vmem>>, vector<8x1xi32>
    %c0_3 = arith.constant 0 : index
    %c0_4 = arith.constant 0 : index
    %2 = vector.load %arg3[%c0_3, %c0_4] : memref<1x4xf32, #tpu.memory_space<vmem>>, vector<1x4xf32>
    %cst = arith.constant dense<0xFF800000> : vector<8xf32>
    %3 = vector.multi_reduction <maximumf>, %0, %cst [1] : vector<8x4xf32> to vector<8xf32>
    %4 = vector.shape_cast %3 : vector<8xf32> to vector<8x1xf32>
    %5 = vector.broadcast %4 : vector<8x1xf32> to vector<8x4xf32>
    %6 = arith.subf %0, %5 : vector<8x4xf32>
    %7 = math.exp %6 : vector<8x4xf32>
    %cst_5 = arith.constant dense<0.000000e+00> : vector<8xf32>
    %8 = vector.multi_reduction <add>, %7, %cst_5 [1] : vector<8x4xf32> to vector<8xf32>
    %9 = vector.shape_cast %8 : vector<8xf32> to vector<8x1xf32>
    %10 = math.log %9 : vector<8x1xf32>
    %11 = arith.addf %10, %4 : vector<8x1xf32>
    %12 = tpu.iota {dimensions = array<i32: 1>} : vector<8x4xi32>
    %13 = vector.broadcast %1 : vector<8x1xi32> to vector<8x4xi32>
    %14 = arith.cmpi eq, %12, %13 : vector<8x4xi32>
    %cst_6 = arith.constant 0.000000e+00 : f32
    %15 = vector.broadcast %cst_6 : f32 to vector<8x4xf32>
    %16 = arith.select %14, %0, %15 : vector<8x4xi1>, vector<8x4xf32>
    %cst_7 = arith.constant dense<0.000000e+00> : vector<8xf32>
    %17 = vector.multi_reduction <add>, %16, %cst_7 [1] : vector<8x4xf32> to vector<8xf32>
    %18 = vector.shape_cast %17 : vector<8xf32> to vector<8x1xf32>
    %cst_8 = arith.constant 0.000000e+00 : f32
    %19 = vector.shape_cast %2 : vector<1x4xf32> to vector<1x4xf32>
    %20 = vector.broadcast %19 : vector<1x4xf32> to vector<8x4xf32>
    %21 = vector.broadcast %cst_8 : f32 to vector<8x4xf32>
    %22 = arith.select %14, %20, %21 : vector<8x4xi1>, vector<8x4xf32>
    %cst_9 = arith.constant dense<0.000000e+00> : vector<8xf32>
    %23 = vector.multi_reduction <add>, %22, %cst_9 [1] : vector<8x4xf32> to vector<8xf32>
    %24 = vector.shape_cast %23 : vector<8xf32> to vector<8x1xf32>
    %25 = arith.subf %18, %11 : vector<8x1xf32>
    %26 = tpu.iota {dimensions = array<i32: 0>} : vector<8x1xi32>
    %c8_i32 = arith.constant 8 : i32
    %27 = arith.muli %arg0, %c8_i32 : i32
    %28 = vector.broadcast %27 : i32 to vector<8x1xi32>
    %29 = arith.addi %26, %28 : vector<8x1xi32>
    %c8_i32_10 = arith.constant 8 : i32
    %30 = vector.broadcast %c8_i32_10 : i32 to vector<8x1xi32>
    %31 = arith.cmpi slt, %29, %30 : vector<8x1xi32>
    %cst_11 = arith.constant 0.000000e+00 : f32
    %32 = vector.broadcast %cst_11 : f32 to vector<8x1xf32>
    %33 = arith.select %31, %24, %32 : vector<8x1xi1>, vector<8x1xf32>
    %cst_12 = arith.constant 0.000000e+00 : f32
    %34 = vector.broadcast %cst_12 : f32 to vector<8x1xf32>
    %35 = arith.subf %34, %33 : vector<8x1xf32>
    %36 = arith.mulf %35, %25 : vector<8x1xf32>
    %cst_13 = arith.constant 0.000000e+00 : f32
    %37 = vector.broadcast %cst_13 : f32 to vector<8x1xf32>
    %38 = arith.select %31, %36, %37 : vector<8x1xi1>, vector<8x1xf32>
    %39 = vector.shape_cast %38 : vector<8x1xf32> to vector<1x8x1xf32>
    %cst_14 = arith.constant dense<0.000000e+00> : vector<1xf32>
    %40 = vector.multi_reduction <add>, %39, %cst_14 [1, 2] : vector<1x8x1xf32> to vector<1xf32>
    %41 = vector.shape_cast %40 : vector<1xf32> to vector<1x1x1xf32>
    %42 = vector.extract %41[0, 0, 0] : f32 from vector<1x1x1xf32>
    %43 = vector.shape_cast %33 : vector<8x1xf32> to vector<1x8x1xf32>
    %cst_15 = arith.constant dense<0.000000e+00> : vector<1xf32>
    %44 = vector.multi_reduction <add>, %43, %cst_15 [1, 2] : vector<1x8x1xf32> to vector<1xf32>
    %45 = vector.shape_cast %44 : vector<1xf32> to vector<1x1x1xf32>
    %46 = vector.extract %45[0, 0, 0] : f32 from vector<1x1x1xf32>
    %47 = tpu.iota {dimensions = array<i32: 2>} : vector<1x8x128xi32>
    %c0_i32 = arith.constant 0 : i32
    %48 = vector.broadcast %c0_i32 : i32 to vector<1x8x128xi32>
    %49 = arith.cmpi eq, %47, %48 : vector<1x8x128xi32>
    %c1_i32 = arith.constant 1 : i32
    %50 = vector.broadcast %c1_i32 : i32 to vector<1x8x128xi32>
    %51 = arith.cmpi eq, %47, %50 : vector<1x8x128xi32>
    %cst_16 = arith.constant 0.000000e+00 : f32
    %52 = vector.broadcast %46 : f32 to vector<1x8x128xf32>
    %53 = vector.broadcast %cst_16 : f32 to vector<1x8x128xf32>
    %54 = arith.select %51, %52, %53 : vector<1x8x128xi1>, vector<1x8x128xf32>
    %55 = vector.broadcast %42 : f32 to vector<1x8x128xf32>
    %56 = arith.select %49, %55, %54 : vector<1x8x128xi1>, vector<1x8x128xf32>
    %c0_17 = arith.constant 0 : index
    %c0_18 = arith.constant 0 : index
    %c0_19 = arith.constant 0 : index
    %57 = vector.load %arg4[%c0_17, %c0_18, %c0_19] : memref<1x8x128xf32, #tpu.memory_space<vmem>>, vector<1x8x128xf32>
    tpu.vector_store %arg4[%c0_17, %c0_18, %c0_19], %56 {strides = array<i32>} : memref<1x8x128xf32, #tpu.memory_space<vmem>>, vector<1x8x128xf32>,
    return
  }
  func.func @transform_0(%arg0: i32) -> (i32, i32) {
    %c0_i32 = arith.constant 0 : i32
    %c0_i32_0 = arith.constant 0 : i32
    return %arg0, %c0_i32 : i32, i32
  }
  func.func @transform_1(%arg0: i32) -> (i32, i32) {
    %c0_i32 = arith.constant 0 : i32
    %c0_i32_0 = arith.constant 0 : i32
    return %arg0, %c0_i32 : i32, i32
  }
  func.func @transform_2(%arg0: i32) -> (i32, i32) {
    %c0_i32 = arith.constant 0 : i32
    %c0_i32_0 = arith.constant 0 : i32
    %c0_i32_1 = arith.constant 0 : i32
    return %c0_i32, %c0_i32_0 : i32, i32
  }
  func.func @transform_3(%arg0: i32) -> (i32, i32, i32) {
    %c0_i32 = arith.constant 0 : i32
    %c0_i32_0 = arith.constant 0 : i32
    %c0_i32_1 = arith.constant 0 : i32
    return %arg0, %c0_i32, %c0_i32_0 : i32, i32, i32
  }
}

</mosaic_0001>

<bundles_post_ra>
// kernel: tpu_custom_call.1
= control target key start
LH: loop header
LB: loop body
LE: loop exit
PB: predicated region body
PF: predicated region fallthrough
CT: control target
= control target key end

     0   :  { %vm18_vm0 = vcmask 31744   ;;  %v141_v2 = vmov 0   ;;  %s179_s0 = inlined_call_operand.vmem [shape: f32[8,4], index: 0, kind: input, shape index: {}]   ;;  %s180_s1 = inlined_call_operand.vmem [shape: s32[8,1], index: 1, kind: input, shape index: {}]   ;;  %s181_s2 = inlined_call_operand.vmem [shape: f32[1,4], index: 2, kind: input, shape index: {}]   ;;  %s182_s3 = inlined_call_operand.hbm [shape: f32[1,8,128], index: 3, kind: output, shape index: {}]  }
   0x1   :  { %v15_v0 = vld [vmem:[%s179_s0] sm:$0xff]  ;;  %109 = vset.pattern.permute.xlu0 %v141_v2 }
   0x2   :  { %v19_v1 = vsel %vm18_vm0, %v15_v0, -inf }
   0x3   :  { %8 = vsyncpa [#allocation3], 0  ;;  %20 = vmax.xlane.f32.xlu0 %v19_v1  ;;  %v16_v3 = vld [vmem:[%s180_s1] sm:$0xff]  ;;  %v31_v9 = vlaneseq  ;;  %vm59_vm2 = vcmask 7168   ;;  %s142_s1 = smov [#allocation2]   ;;  %s94_s20 = sshll.u32 %s182_s3, 4  ;;  %s95_s20 = int_to_ptr.hbm [resolvable:$true] %s94_s20 }
   0x4   :  { %v110_v11 = vld [vmem:[%s181_s2] ss:$0 sm:$0xff]  ;;  %s92_s2 = sshll.u32 %s142_s1, 4  ;;  %s93_s2 = int_to_ptr.vmem [resolvable:$true] %s92_s2 }
   0x5   :  { %v32_v10 = vand.u32 127, %v31_v9 }
   0x7   :  { %vm81_vm3 = vcmp.eq.s32.totalorder %v32_v10, 1  ;;  %vm80_vm4 = vcmp.eq.s32.totalorder %v32_v10, 0 }
  0x17   :  { %34 = vperm.xlu0 %109, %v16_v3  }
  0x76   :  { %v21_v4 = vpop.xlane.xlu0 %20 }
  0x77   :  { %v22_v5 = vsub.f32 %v15_v0, %v21_v4 }
  0x79   :  { %v23_v6 = vmul.f32 1.442695, %v22_v5 }
  0x7b   :  { %111 = vpow2.f32 %v23_v6 }
  0x81   :  { %v112_v7 = vpop.eup %111 }
  0x82   :  { %v25_v8 = vsel %vm18_vm0, %v112_v7, 0.0 }
  0x83   :  { %26 = vadd.xlane.f32.xlu1 %v25_v8 }
  0x89   :  { %v35_v12 = vpop.permute.xlu0 %34 }
  0x8a   :  { %vm36_vm1 = vcmp.eq.s32.totalorder %v32_v10, %v35_v12 }
  0x8b   :  { %v44_v13 = vsel %vm36_vm1, %v110_v11, 0.0  ;;  %v37_v14 = vsel %vm36_vm1, %v15_v0, 0.0 }
  0x8c   :  { %v45_v15 = vsel %vm18_vm0, %v44_v13, 0.0  ;;  %v38_v16 = vsel %vm18_vm0, %v37_v14, 0.0 }
  0x8d   :  { %46 = vadd.xlane.f32.xlu2 %v45_v15  ;;  %39 = vadd.xlane.f32.xlu1 %v38_v16 }
  0xf6   :  { %v27_v17 = vpop.xlane.xlu1 %26 }
  0xf7   :  { %113 = vlog2.f32 %v27_v17 }
  0xfd   :  { %v114_v18 = vpop.eup %113 }
  0xfe   :  { %v29_v19 = vmul.f32 0.6931472, %v114_v18 }
 0x100   :  { %v47_v20 = vpop.xlane.xlu2 %46  ;;  %v30_v21 = vadd.f32 %v29_v19, %v21_v4  ;;  %v40_v22 = vpop.xlane.xlu1 %39 }
 0x101   :  { %v56_v23 = vsub.f32 0.0, %v47_v20  ;;  %v70_v24 = vsel %vm59_vm2, %v47_v20, 0.0 }
 0x102   :  { %v48_v25 = vsub.f32 %v40_v22, %v30_v21  ;;  %71 = vadd.xlane.f32.xlu1 %v70_v24 }
 0x104   :  { %v57_v26 = vmul.f32 %v56_v23, %v48_v25 }
 0x106   :  { %v60_v27 = vsel %vm59_vm2, %v57_v26, 0.0 }
 0x107   :  { %61 = vadd.xlane.f32.xlu2 %v60_v27 }
 0x175   :  { %v72_v28 = vpop.xlane.xlu1 %71 }
 0x176   :  { %v73_v29 = vrot.slane %v72_v28, 4 }
 0x178   :  { %v74_v30 = vadd.f32 %v73_v29, %v72_v28 }
 0x17a   :  { %v75_v31 = vrot.slane %v74_v30, 2  ;;  %v62_v32 = vpop.xlane.xlu2 %61 }
 0x17b   :  { %v63_v33 = vrot.slane %v62_v32, 4 }
 0x17c   :  { %v76_v35 = vadd.f32 %v75_v31, %v74_v30 }
 0x17d   :  { %v64_v34 = vadd.f32 %v63_v33, %v62_v32 }
 0x17e   :  { %v77_v38 = vrot.slane %v76_v35, 1 }
 0x17f   :  { %v65_v36 = vrot.slane %v64_v34, 2 }
 0x180   :  { %v78_v41 = vadd.f32 %v77_v38, %v76_v35 }
 0x181   :  { %v66_v37 = vadd.f32 %v65_v36, %v64_v34 }
 0x183   :  { %v67_v39 = vrot.slane %v66_v37, 1 }
 0x185   :  { %v68_v40 = vadd.f32 %v67_v39, %v66_v37 }
 0x187   :  { %103 = vpush %v68_v40 }
 0x188   :  { %105 = vpush %v78_v41 }
 0x1b8   :  { %s104_s17 = spop %103 }
 0x1b9   :  { %v84_v42 = vstv %s104_s17  ;;  %s106_s21 = spop %105 }
 0x1ba   :  { %v82_v43 = vstv %s106_s21 }
 0x1bb   :  { %v83_v44 = vsel %vm81_vm3, %v82_v43, 0.0 }
 0x1bc   :  { %v85_v45 = vsel %vm80_vm4, %v84_v42, %v83_v44 }
 0x1bd   :  { %86 = vst [vmem:[#allocation2] sm:$0xff] %v85_v45 }
 0x1be   :  { %97 = dma.vmem_to_hbm [thread:$0]  %s93_s2, 128, %s95_s20, [#allocation3]  }
 0x1bf   :  { %139 = dma.done.wait [#allocation3], 128  }
 0x1c0   :  { %140 = vsyncadd [#allocation3], 4294967168 }
 0x1c1   :  { %102 = vsyncpa [#allocation3], 1 }

</bundles_post_ra>
